<compile_context>
chip_gen: v7x
topology: tpu7x:2x2x1
jax: 0.10.0
libtpu: 0.0.40
codegen_flags: <defaults>
</compile_context>

<pallas_src>
import jax
import jax.numpy as jnp
from jax.experimental import pallas as pl
from jax.experimental.pallas import tpu as pltpu


def _round_up(x, m):
    return (x + m - 1) // m * m


# --------------------------------------------------------------------------- kernel
def decoder_kernel(emb_ref, w1_ref, b1_ref, w2_ref, b2_ref, out_ref, h_ref):
    # Layer 1 (Linear with BN pre-folded + ReLU): compute once per batch tile
    # (first N-tile step), cache as bf16 in VMEM scratch, reuse for every N tile.
    @pl.when(pl.program_id(1) == 0)
    def _():
        h = jnp.dot(emb_ref[...].astype(jnp.bfloat16), w1_ref[...],
                    preferred_element_type=jnp.float32)
        h = jnp.maximum(h + b1_ref[...], 0.0)          # bias + ReLU in f32 (v5e-safe)
        # TODO(synk): dropout is identity in eval mode; training-mode dropout would
        # use pltpu.prng_seed / pltpu.prng_random_bits to build the keep mask here.
        h_ref[...] = h.astype(jnp.bfloat16)

    # Layer 2 (Linear) on the current output-column tile: bf16 MXU, f32 accumulate.
    out = jnp.dot(h_ref[...], w2_ref[...], preferred_element_type=jnp.float32)
    out_ref[...] = (out + b2_ref[...]).astype(out_ref.dtype)


# ------------------------------------------------------------------ one-time weight prep
def prepare_decoder_params(w1_t, b1, bn_gamma, bn_beta, bn_mean, bn_var, w2_t, b2,
                           eps=1e-5):
    """Fold BatchNorm1d (running stats) into Linear1, pad feature dims to 128 lanes and
    cast weights to bf16.  Weights are constant in eval mode -> do this ONCE and cache,
    not on every forward call."""
    out_dim, nhid = w1_t.shape
    nfeat = w2_t.shape[1]
    hp = _round_up(nhid, 128)
    np_ = _round_up(nfeat, 128)

    scale = bn_gamma / jnp.sqrt(bn_var + eps)                     # [nhid]
    w1_f = w1_t * scale[None, :]                                  # [out_dim, nhid]
    b1_f = b1 * scale + (bn_beta - bn_mean * scale)               # [nhid]

    # K (out_dim) is intentionally NOT padded: block dims equal to the full array dim
    # are legal, and it avoids padding the activation stream.
    w1_p = jnp.pad(w1_f, ((0, 0), (0, hp - nhid))).astype(jnp.bfloat16)
    b1_p = jnp.pad(b1_f, (0, hp - nhid)).reshape(1, hp).astype(jnp.float32)
    w2_p = jnp.pad(w2_t, ((0, hp - nhid), (0, np_ - nfeat))).astype(jnp.bfloat16)
    b2_p = jnp.pad(b2, (0, np_ - nfeat)).reshape(1, np_).astype(jnp.float32)
    return dict(w1=w1_p, b1=b1_p, w2=w2_p, b2=b2_p,
                out_dim=out_dim, nhid=nhid, nfeat=nfeat, hp=hp, np_=np_)


# ----------------------------------------------------------------------- VMEM planning
def _vmem_budget_bytes():
    # Per-generation budget: ~60% of physical VMEM (128 MiB on v5e/v6e, 64 MiB on v7x),
    # leaving headroom for compiler-internal scratch.  Conservative fallback if the
    # hardware query is unavailable.
    try:
        cap = int(pltpu.get_tpu_info().vmem_capacity_bytes)
    except Exception:
        cap = 64 << 20
    return max(24 << 20, min(96 << 20, int(cap * 0.6)))


def _plan_tiles(B, out_dim, hp, np_, out_itemsize, budget, block_m=None, block_n=None):
    """Pick (tm, tn): batch-tile rows and output-column tile that fit the VMEM budget."""
    if B < 8:
        bm_cap = B                    # block == full batch dim (legal: equals array dim)
    else:
        bm_cap = (B // 8) * 8         # keep block <= array; cdiv grid masks the tail

    def estimate(tm, tn):
        return (2 * tm * out_dim * 4            # emb input (f32), double-buffered
                + 2 * out_dim * hp * 2          # W1 bf16 (<=2 bufs; 1 with Buffered(1))
                + 2 * hp * 4                    # b1
                + 2 * hp * tn * 2               # W2 bf16
                + 2 * tn * 4                    # b2
                + 2 * tm * tn * out_itemsize    # output, double-buffered
                + tm * hp * 2                   # h scratch (bf16)
                + (2 << 20))                    # compiler-internal headroom

    # TODO(synk): if nhid ever grows so large that W1/W2/h alone exceed VMEM, add a
    # grid axis over the hidden dim as well; not needed for typical decoder sizes.
    tn_cands = ([block_n] if block_n is not None else
                [t for t in range(np_, 0, -128) if np_ % t == 0])
    tm_cands = ([block_m] if block_m is not None else
                sorted({min(c, bm_cap) for c in (1024, 512, 256, 128, 64, 32, 16, 8)},
                       reverse=True))

    for min_tm in (min(256, bm_cap), 0):        # prefer >=256-row tiles before shrinking tn
        for tn in tn_cands:
            for tm in tm_cands:
                if tm < min_tm:
                    continue
                est = estimate(tm, tn)
                if est <= budget:
                    return tm, tn, est
    tm, tn = tm_cands[-1], tn_cands[-1]
    return tm, tn, estimate(tm, tn)


# ----------------------------------------------------------------------------- forward
def decoder_apply(params, emb, *, out_dtype=jnp.float32, use_pallas=None,
                  block_m=None, block_n=None):
    """emb: [B, out_dim] -> [B, nfeat] (eval-mode decoder forward)."""
    B, out_dim = emb.shape
    assert out_dim == params["out_dim"], "emb feature dim mismatch"
    hp, np_, nfeat = params["hp"], params["np_"], params["nfeat"]
    w1, b1, w2, b2 = params["w1"], params["b1"], params["w2"], params["b2"]

    if use_pallas is None:
        # Tiny-problem fast path: everything fits in one <=128-wide tile, the MXU is
        # <2% utilised and the pallas launch is pure overhead -> let XLA fuse it.
        use_pallas = not (B <= 128 and out_dim <= 128 and hp <= 128 and np_ <= 128)
    if not use_pallas:
        h = jnp.dot(emb.astype(jnp.bfloat16), w1, preferred_element_type=jnp.float32)
        h = jnp.maximum(h + b1, 0.0)
        y = jnp.dot(h.astype(jnp.bfloat16), w2,
                    preferred_element_type=jnp.float32) + b2
        return y[:, :nfeat].astype(out_dtype)

    out_itemsize = jnp.dtype(out_dtype).itemsize
    budget = _vmem_budget_bytes()
    tm, tn, vmem_est = _plan_tiles(B, out_dim, hp, np_, out_itemsize, budget,
                                   block_m, block_n)
    grid_m = pl.cdiv(B, tm)          # boundary blocks: OOB reads are discarded via the
    grid_n = np_ // tn               # masked writes on the (tm, tn) output block.
    vmem_limit = int(max(budget, vmem_est))

    def call(single_buffer_consts):
        def const_spec(shape, imap):
            # Constant-index operands gain nothing from double-buffering.
            if single_buffer_consts:
                return pl.BlockSpec(shape, imap, pipeline_mode=pl.Buffered(1))
            return pl.BlockSpec(shape, imap)

        w2_spec = const_spec if grid_n == 1 else (lambda s, m: pl.BlockSpec(s, m))
        in_specs = [
            pl.BlockSpec((tm, out_dim), lambda i, j: (i, 0)),   # emb: tiled over batch
            const_spec((out_dim, hp), lambda i, j: (0, 0)),     # W1 (BN folded), resident
            const_spec((1, hp), lambda i, j: (0, 0)),           # b1 (BN folded)
            w2_spec((hp, tn), lambda i, j: (0, j)),             # W2 (column-tiled)
            w2_spec((1, tn), lambda i, j: (0, j)),              # b2
        ]
        return pl.pallas_call(
            decoder_kernel,
            out_shape=jax.ShapeDtypeStruct((B, np_), out_dtype),
            grid=(grid_m, grid_n),
            in_specs=in_specs,
            out_specs=pl.BlockSpec((tm, tn), lambda i, j: (i, j)),
            scratch_shapes=[pltpu.VMEM((tm, hp), jnp.bfloat16)],   # cached layer-1 result
            compiler_params=pltpu.CompilerParams(
                dimension_semantics=("parallel", "arbitrary"),     # batch tiles -> v7x TCs
                vmem_limit_bytes=vmem_limit),
        )(emb, w1, b1, w2, b2)

    try:
        out_p = call(True)      # single-buffer constant weight/bias specs
    except Exception:           # pragma: no cover - fallback if pl.Buffered(1) rejected
        out_p = call(False)

    return out_p[:, :nfeat]


# --------------------------------------------------------------------------- references
def reference_forward_f32(emb, w1_t, b1, bn_gamma, bn_beta, bn_mean, bn_var,
                          w2_t, b2, eps=1e-5):
    h = emb @ w1_t + b1
    h = (h - bn_mean) / jnp.sqrt(bn_var + eps) * bn_gamma + bn_beta
    h = jnp.maximum(h, 0.0)
    return h @ w2_t + b2


def reference_forward_bf16(emb, w1_t, b1, bn_gamma, bn_beta, bn_mean, bn_var,
                           w2_t, b2, eps=1e-5):
    # Mimics the kernel's numerics: BN folded, bf16 MXU inputs, f32 accumulate/epilogue.
    scale = bn_gamma / jnp.sqrt(bn_var + eps)
    w1_f = (w1_t * scale[None, :]).astype(jnp.bfloat16)
    b1_f = b1 * scale + (bn_beta - bn_mean * scale)
    h = jnp.dot(emb.astype(jnp.bfloat16), w1_f,
                preferred_element_type=jnp.float32) + b1_f
    h = jnp.maximum(h, 0.0)
    return jnp.dot(h.astype(jnp.bfloat16), w2_t.astype(jnp.bfloat16),
                   preferred_element_type=jnp.float32) + b2


if __name__ == "__main__":
    # Small, deterministic shapes consistent with decoder(nfeat, nhid, out, dropout)
    nfeat, nhid, out_dim, dropout = 48, 64, 32, 0.5
    B = 8

    key = jax.random.PRNGKey(0)
    k_emb, k_w1, k_b1, k_g, k_bt, k_m, k_v, k_w2, k_b2 = jax.random.split(key, 9)

    emb = jax.random.normal(k_emb, (B, out_dim), dtype=jnp.float32)

    # Linear(out_dim -> nhid): store transposed weight [out_dim, nhid]
    w1_t = jax.random.normal(k_w1, (out_dim, nhid), dtype=jnp.float32) * 0.1
    b1 = jax.random.normal(k_b1, (nhid,), dtype=jnp.float32) * 0.1

    # BatchNorm1d(nhid) parameters + running stats (eval mode)
    bn_gamma = 1.0 + 0.1 * jax.random.normal(k_g, (nhid,), dtype=jnp.float32)
    bn_beta = 0.1 * jax.random.normal(k_bt, (nhid,), dtype=jnp.float32)
    bn_mean = 0.1 * jax.random.normal(k_m, (nhid,), dtype=jnp.float32)
    bn_var = jnp.abs(1.0 + 0.1 * jax.random.normal(k_v, (nhid,), dtype=jnp.float32))

    # Linear(nhid -> nfeat): store transposed weight [nhid, nfeat]
    w2_t = jax.random.normal(k_w2, (nhid, nfeat), dtype=jnp.float32) * 0.1
    b2 = jax.random.normal(k_b2, (nfeat,), dtype=jnp.float32) * 0.1

    # One-time weight preparation (BN fold + pad + bf16 cast).
    params = prepare_decoder_params(w1_t, b1, bn_gamma, bn_beta, bn_mean, bn_var,
                                    w2_t, b2)

    # 1) Force the Pallas kernel at the small test shapes.
    y = jax.block_until_ready(decoder_apply(params, emb, use_pallas=True))
    assert y.shape == (B, nfeat)

    # Tight check against a reference with matching (bf16-MXU) numerics.
    y_bf16 = reference_forward_bf16(emb, w1_t, b1, bn_gamma, bn_beta, bn_mean,
                                    bn_var, w2_t, b2)
    assert jnp.allclose(y, y_bf16, atol=2e-3, rtol=2e-3)

    # Loose check against the full-f32 PyTorch-equivalent reference.
    y_f32 = reference_forward_f32(emb, w1_t, b1, bn_gamma, bn_beta, bn_mean,
                                  bn_var, w2_t, b2)
    assert jnp.allclose(y, y_f32, atol=2e-2, rtol=5e-2)

    # 2) Non-multiple batch: exercises the cdiv grid and masked boundary writes.
    B2 = 300
    emb2 = jax.random.normal(jax.random.PRNGKey(1), (B2, out_dim), dtype=jnp.float32)
    y2 = jax.block_until_ready(decoder_apply(params, emb2, use_pallas=True))
    y2_ref = reference_forward_bf16(emb2, w1_t, b1, bn_gamma, bn_beta, bn_mean,
                                    bn_var, w2_t, b2)
    assert y2.shape == (B2, nfeat)
    assert jnp.allclose(y2, y2_ref, atol=2e-3, rtol=2e-3)

    # 3) Auto mode picks the fused-XLA fast path at these tiny shapes.
    y_fast = jax.block_until_ready(decoder_apply(params, emb))
    assert jnp.allclose(y_fast, y_bf16, atol=2e-3, rtol=2e-3)

    print("KERNEL_OK")
</pallas_src>

<mosaic_0001>
module attributes {stable_mosaic.version = 11 : i64} {
  func.func @decoder_kernel(%arg0: i32, %arg1: i32, %arg2: memref<8x32xf32, #tpu.memory_space<vmem>>, %arg3: memref<32x128xbf16, #tpu.memory_space<vmem>>, %arg4: memref<1x128xf32, #tpu.memory_space<vmem>>, %arg5: memref<128x128xbf16, #tpu.memory_space<vmem>>, %arg6: memref<1x128xf32, #tpu.memory_space<vmem>>, %arg7: memref<8x128xf32, #tpu.memory_space<vmem>>, %arg8: memref<8x128xbf16, #tpu.memory_space<vmem>>) attributes {dimension_semantics = [#tpu.dimension_semantics<parallel>, #tpu.dimension_semantics<arbitrary>], iteration_bounds = array<i64: 1, 1>, scalar_prefetch = 0 : i64, scratch_operands = 1 : i64, tpu.core_type = #tpu.core_type<tc>, window_params = [{transform_indices = @transform_0, window_bounds = array<i64: 8, 32>}, {pipeline_mode = #tpu.pipeline_mode<synchronous>, transform_indices = @transform_1, window_bounds = array<i64: 32, 128>}, {pipeline_mode = #tpu.pipeline_mode<synchronous>, transform_indices = @transform_2, window_bounds = array<i64: 1, 128>}, {pipeline_mode = #tpu.pipeline_mode<synchronous>, transform_indices = @transform_3, window_bounds = array<i64: 128, 128>}, {pipeline_mode = #tpu.pipeline_mode<synchronous>, transform_indices = @transform_4, window_bounds = array<i64: 1, 128>}, {transform_indices = @transform_5, window_bounds = array<i64: 8, 128>}]} {
    %c0_i32 = arith.constant 0 : i32
    %0 = arith.cmpi eq, %arg1, %c0_i32 : i32
    %1 = arith.extui %0 : i1 to i32
    %c0_i32_0 = arith.constant 0 : i32
    %2 = arith.cmpi ne, %1, %c0_i32_0 : i32
    scf.if %2 {
      %c0_8 = arith.constant 0 : index
      %c0_9 = arith.constant 0 : index
      %10 = vector.load %arg2[%c0_8, %c0_9] : memref<8x32xf32, #tpu.memory_space<vmem>>, vector<8x32xf32>
      %11 = arith.truncf %10 : vector<8x32xf32> to vector<8x32xbf16>
      %c0_10 = arith.constant 0 : index
      %c0_11 = arith.constant 0 : index
      %12 = vector.load %arg3[%c0_10, %c0_11] : memref<32x128xbf16, #tpu.memory_space<vmem>>, vector<32x128xbf16>
      %cst_12 = arith.constant dense<0.000000e+00> : vector<8x128xf32>
      %13 = tpu.matmul %11, %12, %cst_12 {dimension_numbers = #tpu.dot_dimension_numbers<[1], [0], [0], [1], [0, 0, 1, 1], [], []>} : vector<8x32xbf16>, vector<32x128xbf16>, vector<8x128xf32> -> vector<8x128xf32>
      %c0_13 = arith.constant 0 : index
      %c0_14 = arith.constant 0 : index
      %14 = vector.load %arg4[%c0_13, %c0_14] : memref<1x128xf32, #tpu.memory_space<vmem>>, vector<1x128xf32>
      %15 = vector.broadcast %14 : vector<1x128xf32> to vector<8x128xf32>
      %16 = arith.addf %13, %15 : vector<8x128xf32>
      %cst_15 = arith.constant 0.000000e+00 : f32
      %17 = vector.broadcast %cst_15 : f32 to vector<8x128xf32>
      %18 = arith.maximumf %16, %17 : vector<8x128xf32>
      %19 = arith.truncf %18 : vector<8x128xf32> to vector<8x128xbf16>
      %c0_16 = arith.constant 0 : index
      %c0_17 = arith.constant 0 : index
      %20 = vector.load %arg8[%c0_16, %c0_17] : memref<8x128xbf16, #tpu.memory_space<vmem>>, vector<8x128xbf16>
      tpu.vector_store %arg8[%c0_16, %c0_17], %19 {strides = array<i32>} : memref<8x128xbf16, #tpu.memory_space<vmem>>, vector<8x128xbf16>,
    } else {
    }
    %c0 = arith.constant 0 : index
    %c0_1 = arith.constant 0 : index
    %3 = vector.load %arg8[%c0, %c0_1] : memref<8x128xbf16, #tpu.memory_space<vmem>>, vector<8x128xbf16>
    %c0_2 = arith.constant 0 : index
    %c0_3 = arith.constant 0 : index
    %4 = vector.load %arg5[%c0_2, %c0_3] : memref<128x128xbf16, #tpu.memory_space<vmem>>, vector<128x128xbf16>
    %cst = arith.constant dense<0.000000e+00> : vector<8x128xf32>
    %5 = tpu.matmul %3, %4, %cst {dimension_numbers = #tpu.dot_dimension_numbers<[1], [0], [0], [1], [0, 0, 1, 1], [], []>} : vector<8x128xbf16>, vector<128x128xbf16>, vector<8x128xf32> -> vector<8x128xf32>
    %c0_4 = arith.constant 0 : index
    %c0_5 = arith.constant 0 : index
    %6 = vector.load %arg6[%c0_4, %c0_5] : memref<1x128xf32, #tpu.memory_space<vmem>>, vector<1x128xf32>
    %7 = vector.broadcast %6 : vector<1x128xf32> to vector<8x128xf32>
    %8 = arith.addf %5, %7 : vector<8x128xf32>
    %c0_6 = arith.constant 0 : index
    %c0_7 = arith.constant 0 : index
    %9 = vector.load %arg7[%c0_6, %c0_7] : memref<8x128xf32, #tpu.memory_space<vmem>>, vector<8x128xf32>
    tpu.vector_store %arg7[%c0_6, %c0_7], %8 {strides = array<i32>} : memref<8x128xf32, #tpu.memory_space<vmem>>, vector<8x128xf32>,
    return
  }
  func.func @transform_0(%arg0: i32, %arg1: i32) -> (i32, i32) {
    %c0_i32 = arith.constant 0 : i32
    %c0_i32_0 = arith.constant 0 : i32
    return %arg0, %c0_i32 : i32, i32
  }
  func.func @transform_1(%arg0: i32, %arg1: i32) -> (i32, i32) {
    %c0_i32 = arith.constant 0 : i32
    %c0_i32_0 = arith.constant 0 : i32
    %c0_i32_1 = arith.constant 0 : i32
    return %c0_i32, %c0_i32_0 : i32, i32
  }
  func.func @transform_2(%arg0: i32, %arg1: i32) -> (i32, i32) {
    %c0_i32 = arith.constant 0 : i32
    %c0_i32_0 = arith.constant 0 : i32
    %c0_i32_1 = arith.constant 0 : i32
    return %c0_i32, %c0_i32_0 : i32, i32
  }
  func.func @transform_3(%arg0: i32, %arg1: i32) -> (i32, i32) {
    %c0_i32 = arith.constant 0 : i32
    %c0_i32_0 = arith.constant 0 : i32
    return %c0_i32, %arg1 : i32, i32
  }
  func.func @transform_4(%arg0: i32, %arg1: i32) -> (i32, i32) {
    %c0_i32 = arith.constant 0 : i32
    %c0_i32_0 = arith.constant 0 : i32
    return %c0_i32, %arg1 : i32, i32
  }
  func.func @transform_5(%arg0: i32, %arg1: i32) -> (i32, i32) {
    %c0_i32 = arith.constant 0 : i32
    return %arg0, %arg1 : i32, i32
  }
}

module attributes {stable_mosaic.version = 11 : i64} {
  func.func @decoder_kernel(%arg0: i32, %arg1: i32, %arg2: memref<8x32xf32, #tpu.memory_space<vmem>>, %arg3: memref<32x128xbf16, #tpu.memory_space<vmem>>, %arg4: memref<1x128xf32, #tpu.memory_space<vmem>>, %arg5: memref<128x128xbf16, #tpu.memory_space<vmem>>, %arg6: memref<1x128xf32, #tpu.memory_space<vmem>>, %arg7: memref<8x128xf32, #tpu.memory_space<vmem>>, %arg8: memref<8x128xbf16, #tpu.memory_space<vmem>>) attributes {dimension_semantics = [#tpu.dimension_semantics<parallel>, #tpu.dimension_semantics<arbitrary>], iteration_bounds = array<i64: 1, 1>, scalar_prefetch = 0 : i64, scratch_operands = 1 : i64, tpu.core_type = #tpu.core_type<tc>, window_params = [{transform_indices = @transform_0, window_bounds = array<i64: 8, 32>}, {pipeline_mode = #tpu.pipeline_mode<synchronous>, transform_indices = @transform_1, window_bounds = array<i64: 32, 128>}, {pipeline_mode = #tpu.pipeline_mode<synchronous>, transform_indices = @transform_2, window_bounds = array<i64: 1, 128>}, {transform_indices = @transform_3, window_bounds = array<i64: 128, 128>}, {transform_indices = @transform_4, window_bounds = array<i64: 1, 128>}, {transform_indices = @transform_5, window_bounds = array<i64: 8, 128>}]} {
    %c0_i32 = arith.constant 0 : i32
    %0 = arith.cmpi eq, %arg1, %c0_i32 : i32
    %1 = arith.extui %0 : i1 to i32
    %c0_i32_0 = arith.constant 0 : i32
    %2 = arith.cmpi ne, %1, %c0_i32_0 : i32
    scf.if %2 {
      %c0_8 = arith.constant 0 : index
      %c0_9 = arith.constant 0 : index
      %10 = vector.load %arg2[%c0_8, %c0_9] : memref<8x32xf32, #tpu.memory_space<vmem>>, vector<8x32xf32>
      %11 = arith.truncf %10 : vector<8x32xf32> to vector<8x32xbf16>
      %c0_10 = arith.constant 0 : index
      %c0_11 = arith.constant 0 : index
      %12 = vector.load %arg3[%c0_10, %c0_11] : memref<32x128xbf16, #tpu.memory_space<vmem>>, vector<32x128xbf16>
      %cst_12 = arith.constant dense<0.000000e+00> : vector<8x128xf32>
      %13 = tpu.matmul %11, %12, %cst_12 {dimension_numbers = #tpu.dot_dimension_numbers<[1], [0], [0], [1], [0, 0, 1, 1], [], []>} : vector<8x32xbf16>, vector<32x128xbf16>, vector<8x128xf32> -> vector<8x128xf32>
      %c0_13 = arith.constant 0 : index
      %c0_14 = arith.constant 0 : index
      %14 = vector.load %arg4[%c0_13, %c0_14] : memref<1x128xf32, #tpu.memory_space<vmem>>, vector<1x128xf32>
      %15 = vector.broadcast %14 : vector<1x128xf32> to vector<8x128xf32>
      %16 = arith.addf %13, %15 : vector<8x128xf32>
      %cst_15 = arith.constant 0.000000e+00 : f32
      %17 = vector.broadcast %cst_15 : f32 to vector<8x128xf32>
      %18 = arith.maximumf %16, %17 : vector<8x128xf32>
      %19 = arith.truncf %18 : vector<8x128xf32> to vector<8x128xbf16>
      %c0_16 = arith.constant 0 : index
      %c0_17 = arith.constant 0 : index
      %20 = vector.load %arg8[%c0_16, %c0_17] : memref<8x128xbf16, #tpu.memory_space<vmem>>, vector<8x128xbf16>
      tpu.vector_store %arg8[%c0_16, %c0_17], %19 {strides = array<i32>} : memref<8x128xbf16, #tpu.memory_space<vmem>>, vector<8x128xbf16>,
    } else {
    }
    %c0 = arith.constant 0 : index
    %c0_1 = arith.constant 0 : index
    %3 = vector.load %arg8[%c0, %c0_1] : memref<8x128xbf16, #tpu.memory_space<vmem>>, vector<8x128xbf16>
    %c0_2 = arith.constant 0 : index
    %c0_3 = arith.constant 0 : index
    %4 = vector.load %arg5[%c0_2, %c0_3] : memref<128x128xbf16, #tpu.memory_space<vmem>>, vector<128x128xbf16>
    %cst = arith.constant dense<0.000000e+00> : vector<8x128xf32>
    %5 = tpu.matmul %3, %4, %cst {dimension_numbers = #tpu.dot_dimension_numbers<[1], [0], [0], [1], [0, 0, 1, 1], [], []>} : vector<8x128xbf16>, vector<128x128xbf16>, vector<8x128xf32> -> vector<8x128xf32>
    %c0_4 = arith.constant 0 : index
    %c0_5 = arith.constant 0 : index
    %6 = vector.load %arg6[%c0_4, %c0_5] : memref<1x128xf32, #tpu.memory_space<vmem>>, vector<1x128xf32>
    %7 = vector.broadcast %6 : vector<1x128xf32> to vector<8x128xf32>
    %8 = arith.addf %5, %7 : vector<8x128xf32>
    %c0_6 = arith.constant 0 : index
    %c0_7 = arith.constant 0 : index
    %9 = vector.load %arg7[%c0_6, %c0_7] : memref<8x128xf32, #tpu.memory_space<vmem>>, vector<8x128xf32>
    tpu.vector_store %arg7[%c0_6, %c0_7], %8 {strides = array<i32>} : memref<8x128xf32, #tpu.memory_space<vmem>>, vector<8x128xf32>,
    return
  }
  func.func @transform_0(%arg0: i32, %arg1: i32) -> (i32, i32) {
    %c0_i32 = arith.constant 0 : i32
    %c0_i32_0 = arith.constant 0 : i32
    return %arg0, %c0_i32 : i32, i32
  }
  func.func @transform_1(%arg0: i32, %arg1: i32) -> (i32, i32) {
    %c0_i32 = arith.constant 0 : i32
    %c0_i32_0 = arith.constant 0 : i32
    %c0_i32_1 = arith.constant 0 : i32
    return %c0_i32, %c0_i32_0 : i32, i32
  }
  func.func @transform_2(%arg0: i32, %arg1: i32) -> (i32, i32) {
    %c0_i32 = arith.constant 0 : i32
    %c0_i32_0 = arith.constant 0 : i32
    %c0_i32_1 = arith.constant 0 : i32
    return %c0_i32, %c0_i32_0 : i32, i32
  }
  func.func @transform_3(%arg0: i32, %arg1: i32) -> (i32, i32) {
    %c0_i32 = arith.constant 0 : i32
    %c0_i32_0 = arith.constant 0 : i32
    return %c0_i32, %arg1 : i32, i32
  }
  func.func @transform_4(%arg0: i32, %arg1: i32) -> (i32, i32) {
    %c0_i32 = arith.constant 0 : i32
    %c0_i32_0 = arith.constant 0 : i32
    return %c0_i32, %arg1 : i32, i32
  }
  func.func @transform_5(%arg0: i32, %arg1: i32) -> (i32, i32) {
    %c0_i32 = arith.constant 0 : i32
    return %arg0, %arg1 : i32, i32
  }
}

</mosaic_0001>

<bundles_post_ra>
// kernel: tpu_custom_call.1
= control target key start
LH: loop header
LB: loop body
LE: loop exit
PB: predicated region body
PF: predicated region fallthrough
CT: control target
= control target key end

     0   :  { %10 = vsyncpa [#allocation4], 0  ;;  %s529_s0 = inlined_call_operand.hbm [shape: f32[8,32], index: 0, kind: input, shape index: {}]   ;;  %s530_s1 = inlined_call_operand.hbm [shape: bf16[32,128], index: 1, kind: input, shape index: {}]   ;;  %s531_s2 = inlined_call_operand.vmem [shape: f32[1,128], index: 2, kind: input, shape index: {}]   ;;  %s532_s3 = inlined_call_operand.hbm [shape: bf16[128,128], index: 3, kind: input, shape index: {}]   ;;  %s533_s4 = inlined_call_operand.vmem [shape: f32[1,128], index: 4, kind: input, shape index: {}]   ;;  %s534_s5 = inlined_call_operand.hbm [shape: f32[8,128], index: 5, kind: output, shape index: {}]  }
   0x1   :  { %11 = vsyncpa [#allocation7], 0 }
   0x2   :  { %12 = vsyncpa [#allocation5], 0  ;;  %s431_s18 = smov [#allocation6]   ;;  %s337_s22 = scalar_lea.hbm %s530_s1, 256 }
   0x3   :  { %s28_s19 = sshll.u32 %s431_s18, 4  ;;  %p338_p0 = scmp.ne.s32.totalorder %s530_s1, %s337_s22  ;;  %s29_s19 = int_to_ptr.vmem [resolvable:$true] %s28_s19 }
   0x4   :  { %p341_p1 = scmp.lt.u32.totalorder %s337_s22, %s530_s1 }
   0x6   :  { %p343_p2 = pnand %p341_p1, %p338_p0 }
   0x8   :  { %346 = shalt.err (!%p343_p2)
}
   0x9   :  { %s347_s27 = scalar_lea.vmem %s29_s19, 256  ;;  %p352_p4 = scmp.lt.s32.totalorder %s29_s19, %s29_s19 }
   0xa   :  { %p348_p3 = scmp.ne.s32.totalorder %s29_s19, %s347_s27  ;;  %p353_p5 = scmp.lt.s32.totalorder %s347_s27, %s347_s27 }
   0xc   :  { %p354_p6 = por %p353_p5, %p352_p4 }
   0xe   :  { %p355_p7 = pnand %p354_p6, %p348_p3 }
  0x10   :  { %358 = shalt.err (!%p355_p7)
}
  0x11   :  { %s432_s28 = smov 64   ;;  %s433_s29 = smov 4  }
  0x12   :  { %34 = dma.hbm_to_vmem [thread:$0]  %s530_s1, 256, %s29_s19, [#allocation7], %s432_s28, %s432_s28, %s433_s29  }
  0x13   :  { %s434_s7 = smov [#allocation3]   ;;  %s435_s9 = smov [#allocation8]  }
  0x14   :  { %s19_s8 = sshll.u32 %s434_s7, 4  ;;  %s42_s10 = sshll.u32 %s435_s9, 4  ;;  %s20_s8 = int_to_ptr.vmem [resolvable:$true] %s19_s8  ;;  %s43_s10 = int_to_ptr.vmem [resolvable:$true] %s42_s10 }
  0x15   :  { %s359_s13 = scalar_lea.hbm %s529_s0, 128 }
  0x16   :  { %p360_p8 = scmp.ne.s32.totalorder %s529_s0, %s359_s13  ;;  %p363_p9 = scmp.lt.u32.totalorder %s359_s13, %s529_s0 }
  0x18   :  { %p365_p10 = pnand %p363_p9, %p360_p8 }
  0x1a   :  { %368 = shalt.err (!%p365_p10)
}
  0x1b   :  { %s369_s1 = scalar_lea.vmem %s20_s8, 128  ;;  %p374_p12 = scmp.lt.s32.totalorder %s20_s8, %s20_s8 }
  0x1c   :  { %p370_p11 = scmp.ne.s32.totalorder %s20_s8, %s369_s1  ;;  %p375_p13 = scmp.lt.s32.totalorder %s369_s1, %s369_s1 }
  0x1e   :  { %p376_p0 = por %p375_p13, %p374_p12 }
  0x20   :  { %p377_p1 = pnand %p376_p0, %p370_p11 }
  0x22   :  { %380 = shalt.err (!%p377_p1)
}
  0x23   :  { %22 = dma.hbm_to_vmem [thread:$0]  %s529_s0, 128, %s20_s8, [#allocation4]  }
  0x24   :  { %s381_s22 = scalar_lea.hbm %s532_s3, 1024 }
  0x25   :  { %p382_p2 = scmp.ne.s32.totalorder %s532_s3, %s381_s22  ;;  %p385_p3 = scmp.lt.u32.totalorder %s381_s22, %s532_s3 }
  0x27   :  { %p387_p4 = pnand %p385_p3, %p382_p2 }
  0x29   :  { %390 = shalt.err (!%p387_p4)
}
  0x2a   :  { %s391_s27 = scalar_lea.vmem %s43_s10, 1024  ;;  %p396_p6 = scmp.lt.s32.totalorder %s43_s10, %s43_s10 }
  0x2b   :  { %p392_p5 = scmp.ne.s32.totalorder %s43_s10, %s391_s27  ;;  %p397_p7 = scmp.lt.s32.totalorder %s391_s27, %s391_s27 }
  0x2d   :  { %p398_p8 = por %p397_p7, %p396_p6 }
  0x2f   :  { %p399_p9 = pnand %p398_p8, %p392_p5 }
  0x31   :  { %402 = shalt.err (!%p399_p9)
}
  0x32   :  { %48 = dma.hbm_to_vmem [thread:$0]  %s532_s3, 1024, %s43_s10, [#allocation7], %s432_s28, %s432_s28, %s433_s29  }
  0x33   :  { %425 = dma.done.wait [#allocation4], 128  }
  0x34   :  { %426 = vsyncadd [#allocation4], 4294967168 }
  0x35   :  { %427 = dma.done.wait [#allocation7], 1280  }
  0x36   :  { %428 = vsyncadd [#allocation7], 4294966016  ;;  %v436_v0 = vmov 0.0   ;;  %vm437_vm0 = vmmov 0   ;;  %v327_v1 = vld [vmem:[#allocation6] sm:$0xff]   ;;  %v328_v2 = vld [vmem:[#allocation6 + $0x8] sm:$0xff]  }
  0x37   :  { %291 = vmatprep.subr.bf16.mxu0 %v436_v0  ;;  %295 = vmatprep.mubr.msk.bf16.mxu0 %vm437_vm0, %v436_v0  ;;  %v65_v3 = vld [vmem:[#allocation3] sm:$0xff]  ;;  %v329_v4 = vld [vmem:[#allocation8] sm:$0xff]   ;;  %vm90_vm1 = vcmask 261120   ;;  %v331_v7 = vld [vmem:[#allocation8 + $0x10] sm:$0xff]   ;;  %s438_s7 = smov [#allocation9]  }
  0x38   :  { %299 = vmatprep.subr.bf16.mxu1 %v436_v0  ;;  %315 = vmatprep.mubr.msk.bf16.mxu1 %vm437_vm0, %v436_v0  ;;  %v66_v5 = vpack.c.bf16 %v65_v3, %v65_v3  ;;  %v330_v6 = vld [vmem:[#allocation8 + $0x8] sm:$0xff]   ;;  %v332_v8 = vld [vmem:[#allocation8 + $0x18] sm:$0xff]   ;;  %v333_v9 = vld [vmem:[#allocation8 + $0x20] sm:$0xff]   ;;  %s256_s8 = sshll.u32 %s438_s7, 4  ;;  %s257_s8 = int_to_ptr.vmem [resolvable:$true] %s256_s8 }
  0x39   :  { %292 = vmatpush3.bf16.msra.mxu0 %v327_v1  ;;  %300 = vmatpush3.bf16.msra.mxu1 %v329_v4  ;;  %v334_v10 = vld [vmem:[#allocation8 + $0x28] sm:$0xff]   ;;  %v335_v11 = vld [vmem:[#allocation8 + $0x30] sm:$0xff]   ;;  %v336_v12 = vld [vmem:[#allocation8 + $0x38] sm:$0xff]   ;;  %p408_p11 = scmp.lt.s32.totalorder %s257_s8, %s257_s8 }
  0x3a   :  { %293 = vmatprep.subr.bf16.mxu0 %v436_v0  ;;  %301 = vmatprep.subr.bf16.mxu1 %v436_v0  ;;  %v266_v13 = vld [vmem:[%s531_s2] ss:$0 sm:$0xff]  ;;  %s403_s2 = scalar_lea.vmem %s257_s8, 128 }
  0x3b   :  { %v270_v22 = vld [vmem:[%s533_s4] ss:$0 sm:$0xff]  ;;  %p404_p10 = scmp.ne.s32.totalorder %s257_s8, %s403_s2  ;;  %p409_p12 = scmp.lt.s32.totalorder %s403_s2, %s403_s2 }
  0x3d   :  { %294 = vmatpush3.bf16.msra.mxu0 %v328_v2  ;;  %302 = vmatpush3.bf16.msra.mxu1 %v330_v6  ;;  %p410_p13 = por %p409_p12, %p408_p11 }
  0x3e   :  { %303 = vmatprep.subr.bf16.mxu1 %v436_v0 }
  0x3f   :  { %p411_p0 = pnand %p410_p13, %p404_p10 }
  0x40   :  { %296 = vmatmul.mubr.msk.bf16.vlgmr.msra.gmra.mrb[0].mxu0 %vm90_vm1, %v66_v5 }
  0x41   :  { %304 = vmatpush3.bf16.msra.mxu1 %v331_v7 }
  0x42   :  { %305 = vmatprep.subr.bf16.mxu1 %v436_v0 }
  0x45   :  { %306 = vmatpush3.bf16.msra.mxu1 %v332_v8 }
  0x46   :  { %307 = vmatprep.subr.bf16.mxu1 %v436_v0 }
  0x49   :  { %308 = vmatpush3.bf16.msra.mxu1 %v333_v9 }
  0x4a   :  { %309 = vmatprep.subr.bf16.mxu1 %v436_v0 }
  0x4d   :  { %310 = vmatpush3.bf16.msra.mxu1 %v334_v10 }
  0x4e   :  { %311 = vmatprep.subr.bf16.mxu1 %v436_v0 }
  0x51   :  { %312 = vmatpush3.bf16.msra.mxu1 %v335_v11 }
  0x52   :  { %313 = vmatprep.subr.bf16.mxu1 %v436_v0 }
  0x55   :  { %314 = vmatpush3.bf16.msra.mxu1 %v336_v12 }
 0x113   :  { %v128_v14 = vpop.f32.mrb[0].mxu0 }
 0x114   :  { %v129_v15 = vadd.f32 %v266_v13, %v128_v14  ;;  %v297_v16 = vpop.f32.mrb[1].mxu0 }
 0x115   :  { %v131_v17 = vpop.f32.mrb[2].mxu0 }
 0x116   :  { %v134_v18 = vmax.f32 %v129_v15, 0.0  ;;  %v298_v19 = vpop.f32.mrb[3].mxu0 }
 0x118   :  { %v135_v20 = vpack.c.bf16 %v134_v18, %v134_v18 }
 0x11a   :  { %136 = vst [vmem:[#allocation2] sm:$0xf] %v135_v20 }
 0x121   :  { %v137_v21 = vld [vmem:[#allocation2] sm:$0xf] }
 0x122   :  { %316 = vmatmul.mubr.bf16.vlgmr.msra.gmra.mrb[0].mxu1 %v137_v21 }
 0x1f5   :  { %v243_v23 = vpop.f32.mrb[0].mxu1 }
 0x1f6   :  { %v244_v24 = vadd.f32 %v270_v22, %v243_v23  ;;  %v317_v25 = vpop.f32.mrb[1].mxu1 }
 0x1f7   :  { %v246_v26 = vpop.f32.mrb[2].mxu1 }
 0x1f8   :  { %249 = vst [vmem:[#allocation9] sm:$0xff] %v244_v24  ;;  %v318_v27 = vpop.f32.mrb[3].mxu1 }
 0x1f9   :  { %414 = shalt.err (!%p411_p0)
}
 0x1fa   :  { %s415_s4 = scalar_lea.hbm %s534_s5, 128 }
 0x1fb   :  { %p416_p1 = scmp.ne.s32.totalorder %s534_s5, %s415_s4  ;;  %p419_p2 = scmp.lt.u32.totalorder %s415_s4, %s534_s5 }
 0x1fd   :  { %p421_p3 = pnand %p419_p2, %p416_p1 }
 0x1ff   :  { %424 = shalt.err (!%p421_p3)
}
 0x200   :  { %259 = dma.vmem_to_hbm [thread:$0]  %s257_s8, 128, %s534_s5, [#allocation5]  }
 0x201   :  { %429 = dma.done.wait [#allocation5], 128  }
 0x202   :  { %430 = vsyncadd [#allocation5], 4294967168 }
 0x203   :  { %263 = vsyncpa [#allocation4], 1 }
 0x204   :  { %264 = vsyncpa [#allocation7], 1 }
 0x205   :  { %265 = vsyncpa [#allocation5], 1 }

// kernel: tpu_custom_call.1
= control target key start
LH: loop header
LB: loop body
LE: loop exit
PB: predicated region body
PF: predicated region fallthrough
CT: control target
= control target key end

     0   :  { %10 = vsyncpa [#allocation4], 0  ;;  %s529_s0 = inlined_call_operand.hbm [shape: f32[8,32], index: 0, kind: input, shape index: {}]   ;;  %s530_s1 = inlined_call_operand.hbm [shape: bf16[32,128], index: 1, kind: input, shape index: {}]   ;;  %s531_s2 = inlined_call_operand.vmem [shape: f32[1,128], index: 2, kind: input, shape index: {}]   ;;  %s532_s3 = inlined_call_operand.hbm [shape: bf16[128,128], index: 3, kind: input, shape index: {}]   ;;  %s533_s4 = inlined_call_operand.vmem [shape: f32[1,128], index: 4, kind: input, shape index: {}]   ;;  %s534_s5 = inlined_call_operand.hbm [shape: f32[8,128], index: 5, kind: output, shape index: {}]  }
   0x1   :  { %11 = vsyncpa [#allocation7], 0 }
   0x2   :  { %12 = vsyncpa [#allocation5], 0  ;;  %s431_s18 = smov [#allocation6]   ;;  %s337_s22 = scalar_lea.hbm %s530_s1, 256 }
   0x3   :  { %s28_s19 = sshll.u32 %s431_s18, 4  ;;  %p338_p0 = scmp.ne.s32.totalorder %s530_s1, %s337_s22  ;;  %s29_s19 = int_to_ptr.vmem [resolvable:$true] %s28_s19 }
   0x4   :  { %p341_p1 = scmp.lt.u32.totalorder %s337_s22, %s530_s1 }
   0x6   :  { %p343_p2 = pnand %p341_p1, %p338_p0 }
   0x8   :  { %346 = shalt.err (!%p343_p2)
}
   0x9   :  { %s347_s27 = scalar_lea.vmem %s29_s19, 256  ;;  %p352_p4 = scmp.lt.s32.totalorder %s29_s19, %s29_s19 }
   0xa   :  { %p348_p3 = scmp.ne.s32.totalorder %s29_s19, %s347_s27  ;;  %p353_p5 = scmp.lt.s32.totalorder %s347_s27, %s347_s27 }
   0xc   :  { %p354_p6 = por %p353_p5, %p352_p4 }
   0xe   :  { %p355_p7 = pnand %p354_p6, %p348_p3 }
  0x10   :  { %358 = shalt.err (!%p355_p7)
}
  0x11   :  { %s432_s28 = smov 64   ;;  %s433_s29 = smov 4  }
  0x12   :  { %34 = dma.hbm_to_vmem [thread:$0]  %s530_s1, 256, %s29_s19, [#allocation7], %s432_s28, %s432_s28, %s433_s29  }
  0x13   :  { %s434_s7 = smov [#allocation3]   ;;  %s435_s9 = smov [#allocation8]  }
  0x14   :  { %s19_s8 = sshll.u32 %s434_s7, 4  ;;  %s42_s10 = sshll.u32 %s435_s9, 4  ;;  %s20_s8 = int_to_ptr.vmem [resolvable:$true] %s19_s8  ;;  %s43_s10 = int_to_ptr.vmem [resolvable:$true] %s42_s10 }
  0x15   :  { %s359_s13 = scalar_lea.hbm %s529_s0, 128 }
  0x16   :  { %p360_p8 = scmp.ne.s32.totalorder %s529_s0, %s359_s13  ;;  %p363_p9 = scmp.lt.u32.totalorder %s359_s13, %s529_s0 }
  0x18   :  { %p365_p10 = pnand %p363_p9, %p360_p8 }
  0x1a   :  { %368 = shalt.err (!%p365_p10)
}
  0x1b   :  { %s369_s1 = scalar_lea.vmem %s20_s8, 128  ;;  %p374_p12 = scmp.lt.s32.totalorder %s20_s8, %s20_s8 }
  0x1c   :  { %p370_p11 = scmp.ne.s32.totalorder %s20_s8, %s369_s1  ;;  %p375_p13 = scmp.lt.s32.totalorder %s369_s1, %s369_s1 }
  0x1e   :  { %p376_p0 = por %p375_p13, %p374_p12 }
  0x20   :  { %p377_p1 = pnand %p376_p0, %p370_p11 }
  0x22   :  { %380 = shalt.err (!%p377_p1)
}
  0x23   :  { %22 = dma.hbm_to_vmem [thread:$0]  %s529_s0, 128, %s20_s8, [#allocation4]  }
  0x24   :  { %s381_s22 = scalar_lea.hbm %s532_s3, 1024 }
  0x25   :  { %p382_p2 = scmp.ne.s32.totalorder %s532_s3, %s381_s22  ;;  %p385_p3 = scmp.lt.u32.totalorder %s381_s22, %s532_s3 }
  0x27   :  { %p387_p4 = pnand %p385_p3, %p382_p2 }
  0x29   :  { %390 = shalt.err (!%p387_p4)
}
  0x2a   :  { %s391_s27 = scalar_lea.vmem %s43_s10, 1024  ;;  %p396_p6 = scmp.lt.s32.totalorder %s43_s10, %s43_s10 }
  0x2b   :  { %p392_p5 = scmp.ne.s32.totalorder %s43_s10, %s391_s27  ;;  %p397_p7 = scmp.lt.s32.totalorder %s391_s27, %s391_s27 }
  0x2d   :  { %p398_p8 = por %p397_p7, %p396_p6 }
  0x2f   :  { %p399_p9 = pnand %p398_p8, %p392_p5 }
  0x31   :  { %402 = shalt.err (!%p399_p9)
}
  0x32   :  { %48 = dma.hbm_to_vmem [thread:$0]  %s532_s3, 1024, %s43_s10, [#allocation7], %s432_s28, %s432_s28, %s433_s29  }
  0x33   :  { %425 = dma.done.wait [#allocation4], 128  }
  0x34   :  { %426 = vsyncadd [#allocation4], 4294967168 }
  0x35   :  { %427 = dma.done.wait [#allocation7], 1280  }
  0x36   :  { %428 = vsyncadd [#allocation7], 4294966016  ;;  %v436_v0 = vmov 0.0   ;;  %vm437_vm0 = vmmov 0   ;;  %v327_v1 = vld [vmem:[#allocation6] sm:$0xff]   ;;  %v328_v2 = vld [vmem:[#allocation6 + $0x8] sm:$0xff]  }
  0x37   :  { %291 = vmatprep.subr.bf16.mxu0 %v436_v0  ;;  %295 = vmatprep.mubr.msk.bf16.mxu0 %vm437_vm0, %v436_v0  ;;  %v65_v3 = vld [vmem:[#allocation3] sm:$0xff]  ;;  %v329_v4 = vld [vmem:[#allocation8] sm:$0xff]   ;;  %vm90_vm1 = vcmask 261120   ;;  %v331_v7 = vld [vmem:[#allocation8 + $0x10] sm:$0xff]   ;;  %s438_s7 = smov [#allocation9]  }
  0x38   :  { %299 = vmatprep.subr.bf16.mxu1 %v436_v0  ;;  %315 = vmatprep.mubr.msk.bf16.mxu1 %vm437_vm0, %v436_v0  ;;  %v66_v5 = vpack.c.bf16 %v65_v3, %v65_v3  ;;  %v330_v6 = vld [vmem:[#allocation8 + $0x8] sm:$0xff]   ;;  %v332_v8 = vld [vmem:[#allocation8 + $0x18] sm:$0xff]   ;;  %v333_v9 = vld [vmem:[#allocation8 + $0x20] sm:$0xff]   ;;  %s256_s8 = sshll.u32 %s438_s7, 4  ;;  %s257_s8 = int_to_ptr.vmem [resolvable:$true] %s256_s8 }
  0x39   :  { %292 = vmatpush3.bf16.msra.mxu0 %v327_v1  ;;  %300 = vmatpush3.bf16.msra.mxu1 %v329_v4  ;;  %v334_v10 = vld [vmem:[#allocation8 + $0x28] sm:$0xff]   ;;  %v335_v11 = vld [vmem:[#allocation8 + $0x30] sm:$0xff]   ;;  %v336_v12 = vld [vmem:[#allocation8 + $0x38] sm:$0xff]   ;;  %p408_p11 = scmp.lt.s32.totalorder %s257_s8, %s257_s8 }
  0x3a   :  { %293 = vmatprep.subr.bf16.mxu0 %v436_v0  ;;  %301 = vmatprep.subr.bf16.mxu1 %v436_v0  ;;  %v266_v13 = vld [vmem:[%s531_s2] ss:$0 sm:$0xff]  ;;  %s403_s2 = scalar_lea.vmem %s257_s8, 128 }
  0x3b   :  { %v270_v22 = vld [vmem:[%s533_s4] ss:$0 sm:$0xff]  ;;  %p404_p10 = scmp.ne.s32.totalorder %s257_s8, %s403_s2  ;;  %p409_p12 = scmp.lt.s32.totalorder %s403_s2, %s403_s2 }
  0x3d   :  { %294 = vmatpush3.bf16.msra.mxu0 %v328_v2  ;;  %302 = vmatpush3.bf16.msra.mxu1 %v330_v6  ;;  %p410_p13 = por %p409_p12, %p408_p11 }
  0x3e   :  { %303 = vmatprep.subr.bf16.mxu1 %v436_v0 }
  0x3f   :  { %p411_p0 = pnand %p410_p13, %p404_p10 }
  0x40   :  { %296 = vmatmul.mubr.msk.bf16.vlgmr.msra.gmra.mrb[0].mxu0 %vm90_vm1, %v66_v5 }
  0x41   :  { %304 = vmatpush3.bf16.msra.mxu1 %v331_v7 }
  0x42   :  { %305 = vmatprep.subr.bf16.mxu1 %v436_v0 }
  0x45   :  { %306 = vmatpush3.bf16.msra.mxu1 %v332_v8 }
  0x46   :  { %307 = vmatprep.subr.bf16.mxu1 %v436_v0 }
  0x49   :  { %308 = vmatpush3.bf16.msra.mxu1 %v333_v9 }
  0x4a   :  { %309 = vmatprep.subr.bf16.mxu1 %v436_v0 }
  0x4d   :  { %310 = vmatpush3.bf16.msra.mxu1 %v334_v10 }
  0x4e   :  { %311 = vmatprep.subr.bf16.mxu1 %v436_v0 }
  0x51   :  { %312 = vmatpush3.bf16.msra.mxu1 %v335_v11 }
  0x52   :  { %313 = vmatprep.subr.bf16.mxu1 %v436_v0 }
  0x55   :  { %314 = vmatpush3.bf16.msra.mxu1 %v336_v12 }
 0x113   :  { %v128_v14 = vpop.f32.mrb[0].mxu0 }
 0x114   :  { %v129_v15 = vadd.f32 %v266_v13, %v128_v14  ;;  %v297_v16 = vpop.f32.mrb[1].mxu0 }
 0x115   :  { %v131_v17 = vpop.f32.mrb[2].mxu0 }
 0x116   :  { %v134_v18 = vmax.f32 %v129_v15, 0.0  ;;  %v298_v19 = vpop.f32.mrb[3].mxu0 }
 0x118   :  { %v135_v20 = vpack.c.bf16 %v134_v18, %v134_v18 }
 0x11a   :  { %136 = vst [vmem:[#allocation2] sm:$0xf] %v135_v20 }
 0x121   :  { %v137_v21 = vld [vmem:[#allocation2] sm:$0xf] }
 0x122   :  { %316 = vmatmul.mubr.bf16.vlgmr.msra.gmra.mrb[0].mxu1 %v137_v21 }
 0x1f5   :  { %v243_v23 = vpop.f32.mrb[0].mxu1 }
 0x1f6   :  { %v244_v24 = vadd.f32 %v270_v22, %v243_v23  ;;  %v317_v25 = vpop.f32.mrb[1].mxu1 }
 0x1f7   :  { %v246_v26 = vpop.f32.mrb[2].mxu1 }
 0x1f8   :  { %249 = vst [vmem:[#allocation9] sm:$0xff] %v244_v24  ;;  %v318_v27 = vpop.f32.mrb[3].mxu1 }
 0x1f9   :  { %414 = shalt.err (!%p411_p0)
}
 0x1fa   :  { %s415_s4 = scalar_lea.hbm %s534_s5, 128 }
 0x1fb   :  { %p416_p1 = scmp.ne.s32.totalorder %s534_s5, %s415_s4  ;;  %p419_p2 = scmp.lt.u32.totalorder %s415_s4, %s534_s5 }
 0x1fd   :  { %p421_p3 = pnand %p419_p2, %p416_p1 }
 0x1ff   :  { %424 = shalt.err (!%p421_p3)
}
 0x200   :  { %259 = dma.vmem_to_hbm [thread:$0]  %s257_s8, 128, %s534_s5, [#allocation5]  }
 0x201   :  { %429 = dma.done.wait [#allocation5], 128  }
 0x202   :  { %430 = vsyncadd [#allocation5], 4294967168 }
 0x203   :  { %263 = vsyncpa [#allocation4], 1 }
 0x204   :  { %264 = vsyncpa [#allocation7], 1 }
 0x205   :  { %265 = vsyncpa [#allocation5], 1 }

</bundles_post_ra>
